<compile_context>
chip_gen: v7x
topology: tpu7x:2x2x1
jax: 0.10.0
libtpu: 0.0.40
codegen_flags: <defaults>
</compile_context>

<pallas_src>
import jax
import jax.numpy as jnp
from jax import lax
from jax.experimental import pallas as pl
from jax.experimental.pallas import tpu as pltpu

NUM_REL_CLS = 101          # fixed by the module
POOLING_DIM = 128          # small example pooling_dim
NUM_INSTANCES = 8          # small example bag size
NUM_BAGS = 4               # small example batch of bags
NEG_INF = -1e30            # bias padding -> exp() == 0, never wins a max


# ------------------------------- kernels -------------------------------------
def bag_one_eval_kernel(x_ref, w_ref, b_ref, out_ref):
    """Per-bag eval branch: bag_logits = max over instances of softmax(fc(x))."""
    x = x_ref[0]                                                      # [N, D]
    logits = jnp.dot(x, w_ref[...],
                     preferred_element_type=jnp.float32) + b_ref[...]  # [N, Cp]
    m = jnp.max(logits, axis=-1, keepdims=True)
    e = jnp.exp(logits - m)
    denom = jnp.sum(e, axis=-1, keepdims=True)
    p = e * pl.reciprocal(denom, approx=True)                         # EUP slot
    out_ref[...] = jnp.max(p, axis=0, keepdims=True).reshape(out_ref.shape)


def bag_one_train_kernel(lbl_ref, x_ref, w_ref, b_ref, out_ref):
    """Per-bag train branch: argmax of softmax(fc(x))[:, picked_label] over the
    instances, then emit that instance's classifier logits (dropout==identity)."""
    bag = pl.program_id(0)
    lbl = lbl_ref[bag]                                                # SMEM scalar
    x = x_ref[0]                                                      # [N, D]
    logits = jnp.dot(x, w_ref[...],
                     preferred_element_type=jnp.float32) + b_ref[...]  # [N, Cp]
    n, c = logits.shape

    # Only the picked-label column needs normalizing (not the full softmax).
    m = jnp.max(logits, axis=-1, keepdims=True)
    e = jnp.exp(logits - m)
    denom = jnp.sum(e, axis=-1, keepdims=True)
    lane_ids = lax.broadcasted_iota(jnp.int32, (n, c), 1)
    col_e = jnp.sum(jnp.where(lane_ids == lbl, e, 0.0),
                    axis=-1, keepdims=True)                           # [N, 1]
    # Exact reciprocal: the instance ranking must match torch.argmax.
    col = col_e * pl.reciprocal(denom, approx=False)                  # [N, 1]

    # First argmax over instances (torch.argmax returns the first occurrence).
    col_max = jnp.max(col, axis=0, keepdims=True)
    row_ids = lax.broadcasted_iota(jnp.int32, (n, 1), 0)
    idx = jnp.min(jnp.where(col >= col_max, row_ids, jnp.int32(n)))

    # dropout == identity in this deterministic forward, so the selected
    # instance's logits ARE fc(drop(bag_rep)); reuse them (no 2nd matmul, no
    # feature-row gather).
    # TODO(synk): stochastic nn.Dropout(p=0.2) would need the bag_rep gather +
    # second fc with a pltpu.prng_seed/prng_random_bits mask.
    sel = row_ids == idx                                              # [N, 1]
    out_ref[...] = jnp.sum(jnp.where(sel, logits, 0.0),
                           axis=0, keepdims=True).reshape(out_ref.shape)


# ------------------------------- wrappers -------------------------------------
def _pad_classifier(params):
    """Pad the classifier to a 128-lane-aligned class dim."""
    w = params["w"].astype(jnp.float32)                               # [D, C]
    b = jnp.reshape(params["b"], (1, -1)).astype(jnp.float32)         # [1, C]
    d, c = w.shape
    c_pad = ((c + 127) // 128) * 128
    if c_pad != c:
        w = jnp.pad(w, ((0, 0), (0, c_pad - c)))
        b = jnp.pad(b, ((0, 0), (0, c_pad - c)), constant_values=NEG_INF)
    return w, b, c, c_pad


def bag_one_forward_batched(params, features, picked_labels,
                            training=False, matmul_dtype=None):
    """features: [B, N, D], picked_labels: [B] int32 -> bag_logits [B, 101]."""
    bsz, n, d = features.shape
    w, b, c, c_pad = _pad_classifier(params)

    features = features.astype(jnp.float32)
    if matmul_dtype is not None:            # bf16 on v6e/v7x: halves W/feature
        features = features.astype(matmul_dtype)   # DMA; softmax stays f32.
        w = w.astype(matmul_dtype)

    itemsize = jnp.dtype(features.dtype).itemsize
    cost = pl.CostEstimate(
        flops=2 * bsz * n * d * c_pad,
        transcendentals=bsz * n * c_pad,
        bytes_accessed=bsz * n * d * itemsize + d * c_pad * itemsize
        + bsz * c_pad * 4)
    cparams = pltpu.CompilerParams(dimension_semantics=("parallel",))
    out_shape = jax.ShapeDtypeStruct((bsz, 1, c_pad), jnp.float32)

    if training:
        grid_spec = pltpu.PrefetchScalarGridSpec(
            num_scalar_prefetch=1, grid=(bsz,),
            in_specs=[
                pl.BlockSpec((1, n, d), lambda i, lbl: (i, 0, 0)),
                pl.BlockSpec((d, c_pad), lambda i, lbl: (0, 0)),   # VMEM-resident
                pl.BlockSpec((1, c_pad), lambda i, lbl: (0, 0)),   # VMEM-resident
            ],
            out_specs=pl.BlockSpec((1, 1, c_pad), lambda i, lbl: (i, 0, 0)))
        out = pl.pallas_call(
            bag_one_train_kernel, out_shape=out_shape, grid_spec=grid_spec,
            compiler_params=cparams, cost_estimate=cost,
        )(picked_labels.astype(jnp.int32), features, w, b)
    else:
        grid_spec = pltpu.PrefetchScalarGridSpec(
            num_scalar_prefetch=0, grid=(bsz,),
            in_specs=[
                pl.BlockSpec((1, n, d), lambda i: (i, 0, 0)),
                pl.BlockSpec((d, c_pad), lambda i: (0, 0)),        # VMEM-resident
                pl.BlockSpec((1, c_pad), lambda i: (0, 0)),        # VMEM-resident
            ],
            out_specs=pl.BlockSpec((1, 1, c_pad), lambda i: (i, 0, 0)))
        out = pl.pallas_call(
            bag_one_eval_kernel, out_shape=out_shape, grid_spec=grid_spec,
            compiler_params=cparams, cost_estimate=cost,
        )(features, w, b)

    return out[:, 0, :c]                                              # [B, 101]


def bag_one_forward(params, features, picked_label, bag_attention_target,
                    training=False, matmul_dtype=None):
    """Module-equivalent single-bag forward.  Returns (bag_logits[101], loss)."""
    del bag_attention_target                      # unused by the module forward
    logits = bag_one_forward_batched(
        params, features[None],
        jnp.reshape(picked_label, (1,)).astype(jnp.int32),
        training=training, matmul_dtype=matmul_dtype)
    attention_loss = jnp.float32(0.0)
    return logits[0], attention_loss


# --------------------------- pure-JAX reference --------------------------------
def bag_one_reference(params, features, picked_label, training=False):
    logits = features @ params["w"] + params["b"]          # [N, C]
    p = jax.nn.softmax(logits, axis=-1)
    if training:
        idx = jnp.argmax(p[:, picked_label])
        bag_rep = features[idx]
        return bag_rep @ params["w"] + params["b"][0]      # dropout == identity
    return jnp.max(p, axis=0)


# ----------------------------------- main --------------------------------------
if __name__ == "__main__":
    key = jax.random.PRNGKey(0)
    k1, k2, k3, k4 = jax.random.split(key, 4)

    B, N, D, C = NUM_BAGS, NUM_INSTANCES, POOLING_DIM, NUM_REL_CLS
    params = {
        "w": 0.05 * jax.random.normal(k1, (D, C), jnp.float32),   # x @ W + b layout
        "b": 0.05 * jax.random.normal(k2, (1, C), jnp.float32),
    }
    features_b = jax.random.normal(k3, (B, N, D), jnp.float32)    # B bags of N inst.
    labels_b = jax.random.randint(k4, (B,), 0, C).astype(jnp.int32)
    features = features_b[0]
    picked_label = labels_b[0]
    bag_attention_target = jnp.zeros((N,), jnp.int32)             # unused by forward

    with jax.default_matmul_precision("highest"):
        eval_fn = jax.jit(lambda p, f: bag_one_forward(
            p, f, picked_label, bag_attention_target, training=False))
        train_fn = jax.jit(lambda p, f, l: bag_one_forward(
            p, f, l, bag_attention_target, training=True))
        eval_b_fn = jax.jit(lambda p, f: bag_one_forward_batched(
            p, f, labels_b, training=False))
        train_b_fn = jax.jit(lambda p, f, l: bag_one_forward_batched(
            p, f, l, training=True))

        out_eval, loss = eval_fn(params, features)
        out_train, _ = train_fn(params, features, picked_label)
        out_eval_b = eval_b_fn(params, features_b)
        out_train_b = train_b_fn(params, features_b, labels_b)
        jax.block_until_ready((out_eval, out_train, out_eval_b, out_train_b))

        ref_eval = bag_one_reference(params, features, picked_label, False)
        ref_train = bag_one_reference(params, features, picked_label, True)
        ref_eval_b = jnp.stack([bag_one_reference(params, features_b[i],
                                                  labels_b[i], False)
                                for i in range(B)])
        ref_train_b = jnp.stack([bag_one_reference(params, features_b[i],
                                                   labels_b[i], True)
                                 for i in range(B)])

    assert out_eval.shape == (NUM_REL_CLS,), out_eval.shape
    assert out_train.shape == (NUM_REL_CLS,), out_train.shape
    assert out_eval_b.shape == (B, NUM_REL_CLS), out_eval_b.shape
    assert out_train_b.shape == (B, NUM_REL_CLS), out_train_b.shape

    def _err(a, r):
        return float(jnp.max(jnp.abs(a - r)))

    assert _err(out_eval, ref_eval) < 2e-3, _err(out_eval, ref_eval)
    assert _err(out_train, ref_train) < 2e-3, _err(out_train, ref_train)
    assert _err(out_eval_b, ref_eval_b) < 2e-3, _err(out_eval_b, ref_eval_b)
    assert _err(out_train_b, ref_train_b) < 2e-3, _err(out_train_b, ref_train_b)
    assert float(loss) == 0.0
    print("KERNEL_OK")
</pallas_src>

<mosaic_0001>
module attributes {stable_mosaic.version = 11 : i64} {
  func.func @bag_one_eval_kernel(%arg0: i32, %arg1: memref<1x8x128xf32, #tpu.memory_space<vmem>>, %arg2: memref<128x128xf32, #tpu.memory_space<vmem>>, %arg3: memref<1x128xf32, #tpu.memory_space<vmem>>, %arg4: memref<1x1x128xf32, #tpu.memory_space<vmem>>) attributes {dimension_semantics = [#tpu.dimension_semantics<parallel>], iteration_bounds = array<i64: 1>, scalar_prefetch = 0 : i64, scratch_operands = 0 : i64, tpu.core_type = #tpu.core_type<tc>, window_params = [{transform_indices = @transform_0, window_bounds = array<i64: 1, 8, 128>}, {pipeline_mode = #tpu.pipeline_mode<synchronous>, transform_indices = @transform_1, window_bounds = array<i64: 128, 128>}, {pipeline_mode = #tpu.pipeline_mode<synchronous>, transform_indices = @transform_2, window_bounds = array<i64: 1, 128>}, {transform_indices = @transform_3, window_bounds = array<i64: 1, 1, 128>}]} {
    %c0 = arith.constant 0 : index
    %c0_0 = arith.constant 0 : index
    %c0_1 = arith.constant 0 : index
    %0 = vector.load %arg1[%c0, %c0_0, %c0_1] : memref<1x8x128xf32, #tpu.memory_space<vmem>>, vector<1x8x128xf32>
    %1 = vector.shape_cast %0 : vector<1x8x128xf32> to vector<8x128xf32>
    %c0_2 = arith.constant 0 : index
    %c0_3 = arith.constant 0 : index
    %2 = vector.load %arg2[%c0_2, %c0_3] : memref<128x128xf32, #tpu.memory_space<vmem>>, vector<128x128xf32>
    %cst = arith.constant dense<0.000000e+00> : vector<8x128xf32>
    %3 = tpu.matmul %1, %2, %cst {dimension_numbers = #tpu.dot_dimension_numbers<[1], [0], [0], [1], [0, 0, 1, 1], [], []>, precision = #tpu.contract_precision<fp32>} : vector<8x128xf32>, vector<128x128xf32>, vector<8x128xf32> -> vector<8x128xf32>
    %c0_4 = arith.constant 0 : index
    %c0_5 = arith.constant 0 : index
    %4 = vector.load %arg3[%c0_4, %c0_5] : memref<1x128xf32, #tpu.memory_space<vmem>>, vector<1x128xf32>
    %5 = vector.broadcast %4 : vector<1x128xf32> to vector<8x128xf32>
    %6 = arith.addf %3, %5 : vector<8x128xf32>
    %cst_6 = arith.constant dense<0xFF800000> : vector<8xf32>
    %7 = vector.multi_reduction <maximumf>, %6, %cst_6 [1] : vector<8x128xf32> to vector<8xf32>
    %8 = vector.shape_cast %7 : vector<8xf32> to vector<8x1xf32>
    %9 = vector.broadcast %8 : vector<8x1xf32> to vector<8x128xf32>
    %10 = arith.subf %6, %9 : vector<8x128xf32>
    %11 = math.exp %10 : vector<8x128xf32>
    %cst_7 = arith.constant dense<0.000000e+00> : vector<8xf32>
    %12 = vector.multi_reduction <add>, %11, %cst_7 [1] : vector<8x128xf32> to vector<8xf32>
    %13 = vector.shape_cast %12 : vector<8xf32> to vector<8x1xf32>
    %14 = tpu.reciprocal %13 {approx = true} : vector<8x1xf32> -> vector<8x1xf32>
    %15 = vector.broadcast %14 : vector<8x1xf32> to vector<8x128xf32>
    %16 = arith.mulf %11, %15 : vector<8x128xf32>
    %cst_8 = arith.constant dense<0xFF800000> : vector<128xf32>
    %17 = vector.multi_reduction <maximumf>, %16, %cst_8 [0] : vector<8x128xf32> to vector<128xf32>
    %18 = vector.shape_cast %17 : vector<128xf32> to vector<1x128xf32>
    %19 = vector.shape_cast %18 : vector<1x128xf32> to vector<1x1x128xf32>
    %c0_9 = arith.constant 0 : index
    %c0_10 = arith.constant 0 : index
    %c0_11 = arith.constant 0 : index
    %20 = vector.load %arg4[%c0_9, %c0_10, %c0_11] : memref<1x1x128xf32, #tpu.memory_space<vmem>>, vector<1x1x128xf32>
    tpu.vector_store %arg4[%c0_9, %c0_10, %c0_11], %19 {strides = array<i32>} : memref<1x1x128xf32, #tpu.memory_space<vmem>>, vector<1x1x128xf32>,
    return
  }
  func.func @transform_0(%arg0: i32) -> (i32, i32, i32) {
    %c0_i32 = arith.constant 0 : i32
    %c0_i32_0 = arith.constant 0 : i32
    %c0_i32_1 = arith.constant 0 : i32
    return %arg0, %c0_i32, %c0_i32_0 : i32, i32, i32
  }
  func.func @transform_1(%arg0: i32) -> (i32, i32) {
    %c0_i32 = arith.constant 0 : i32
    %c0_i32_0 = arith.constant 0 : i32
    %c0_i32_1 = arith.constant 0 : i32
    return %c0_i32, %c0_i32_0 : i32, i32
  }
  func.func @transform_2(%arg0: i32) -> (i32, i32) {
    %c0_i32 = arith.constant 0 : i32
    %c0_i32_0 = arith.constant 0 : i32
    %c0_i32_1 = arith.constant 0 : i32
    return %c0_i32, %c0_i32_0 : i32, i32
  }
  func.func @transform_3(%arg0: i32) -> (i32, i32, i32) {
    %c0_i32 = arith.constant 0 : i32
    %c0_i32_0 = arith.constant 0 : i32
    %c0_i32_1 = arith.constant 0 : i32
    return %arg0, %c0_i32, %c0_i32_0 : i32, i32, i32
  }
}

</mosaic_0001>

<bundles_post_ra>
// kernel: _lambda_.1
= control target key start
LH: loop header
LB: loop body
LE: loop exit
PB: predicated region body
PF: predicated region fallthrough
CT: control target
= control target key end

     0   :  { %v1173_v0 = vmov 0.0|0.0   ;;  %vm1174_vm0 = vmmov 0   ;;  %v1175_v8 = vmov 0.0   ;;  %s1500_s1 = inlined_call_operand.vmem [shape: f32[128,128], index: 1, kind: input, shape index: {}]   ;;  %s1501_s0 = inlined_call_operand.vmem [shape: f32[1,8,128], index: 0, kind: input, shape index: {}]   ;;  %s1502_s2 = inlined_call_operand.vmem [shape: f32[1,128], index: 2, kind: input, shape index: {}]   ;;  %s1503_s3 = inlined_call_operand.vmem [shape: f32[1,1,128], index: 3, kind: output, shape index: {}]  }
   0x1   :  { %1012 = vmatprep.subr.bf16.mxu1 %v1173_v0  ;;  %1084 = vmatprep.subr.bf16.mxu0 %v1173_v0  ;;  %v15_v1 = vld [vmem:[%s1500_s1] sm:$0xff]  ;;  %v16_v2 = vld [vmem:[%s1500_s1 + $0x8] sm:$0xff]  ;;  %v17_v3 = vld [vmem:[%s1500_s1 + $0x10] sm:$0xff] }
   0x2   :  { %v39_v4 = vand.u32 4294901760, %v15_v1  ;;  %v42_v5 = vand.u32 4294901760, %v16_v2  ;;  %v18_v6 = vld [vmem:[%s1500_s1 + $0x18] sm:$0xff]  ;;  %v45_v7 = vand.u32 4294901760, %v17_v3  ;;  %834 = vmatprep.mubr.msk.f32.mxu1 %vm1174_vm0, %v1175_v8  ;;  %939 = vmatprep.mubr.msk.f32.mxu0 %vm1174_vm0, %v1175_v8  ;;  %v19_v10 = vld [vmem:[%s1500_s1 + $0x20] sm:$0xff]  ;;  %v20_v11 = vld [vmem:[%s1500_s1 + $0x28] sm:$0xff] }
   0x3   :  { %v48_v9 = vand.u32 4294901760, %v18_v6  ;;  %v51_v14 = vand.u32 4294901760, %v19_v10  ;;  %v54_v15 = vand.u32 4294901760, %v20_v11  ;;  %v21_v16 = vld [vmem:[%s1500_s1 + $0x30] sm:$0xff]  ;;  %v22_v17 = vld [vmem:[%s1500_s1 + $0x38] sm:$0xff]  ;;  %v1243_v21 = vld [vmem:[%s1500_s1 + $0x40] sm:$0xff] }
   0x4   :  { %v1220_v12 = vpack.c.bf16 %v42_v5, %v39_v4  ;;  %v57_v19 = vand.u32 4294901760, %v21_v16  ;;  %v60_v20 = vand.u32 4294901760, %v22_v17  ;;  %v1248_v22 = vld [vmem:[%s1500_s1 + $0x48] sm:$0xff]  ;;  %v63_v24 = vand.u32 4294901760, %v1243_v21  ;;  %v14_v26 = vld [vmem:[%s1501_s0] sm:$0xff]  ;;  %v1264_v27 = vld [vmem:[%s1500_s1 + $0x50] sm:$0xff] }
   0x5   :  { %v1224_v13 = vpack.c.bf16 %v48_v9, %v45_v7  ;;  %v1236_v18 = vpack.c.bf16 %v54_v15, %v51_v14  ;;  %v66_v25 = vand.u32 4294901760, %v1248_v22  ;;  %v1269_v28 = vld [vmem:[%s1500_s1 + $0x58] sm:$0xff]  ;;  %v1271_v29 = vsub.f32 %v15_v1, %v39_v4  ;;  %v1286_v35 = vld [vmem:[%s1500_s1 + $0x60] sm:$0xff]  ;;  %v1293_v36 = vld [vmem:[%s1500_s1 + $0x68] sm:$0xff] }
   0x6   :  { %1014 = vmatpush3.bf16.msra.mxu1 %v1220_v12  ;;  %1086 = vmatpush3.bf16.msra.mxu0 %v1220_v12  ;;  %v1252_v23 = vpack.c.bf16 %v60_v20, %v57_v19  ;;  %v1273_v30 = vand.u32 4294901760, %v14_v26  ;;  %v1275_v31 = vsub.f32 %v16_v2, %v42_v5  ;;  %v69_v33 = vand.u32 4294901760, %v1264_v27  ;;  %v1315_v43 = vld [vmem:[%s1500_s1 + $0x70] sm:$0xff]  ;;  %v1320_v44 = vld [vmem:[%s1500_s1 + $0x78] sm:$0xff] }
   0x7   :  { %1015 = vmatprep.subr.bf16.mxu1 %v1173_v0  ;;  %1087 = vmatprep.subr.bf16.mxu0 %v1173_v0  ;;  %v1279_v32 = vpack.c.bf16 %v66_v25, %v63_v24  ;;  %v72_v34 = vand.u32 4294901760, %v1269_v28  ;;  %v1295_v37 = vsub.f32 %v17_v3, %v45_v7  ;;  %v1297_v38 = vsub.f32 %v18_v6, %v48_v9 }
   0x8   :  { %v75_v39 = vand.u32 4294901760, %v1286_v35  ;;  %v1301_v40 = vsub.f32 %v14_v26, %v1273_v30  ;;  %v78_v42 = vand.u32 4294901760, %v1293_v36  ;;  %v132_v45 = vand.u32 4294901760, %v1271_v29 }
   0x9   :  { %v1309_v41 = vpack.c.bf16 %v72_v34, %v69_v33  ;;  %v139_v46 = vand.u32 4294901760, %v1275_v31  ;;  %v1326_v47 = vsub.f32 %v19_v10, %v51_v14  ;;  %v1328_v48 = vsub.f32 %v20_v11, %v54_v15 }
   0xa   :  { %1017 = vmatpush3.bf16.msra.mxu1 %v1224_v13  ;;  %1089 = vmatpush3.bf16.msra.mxu0 %v1224_v13  ;;  %v81_v49 = vand.u32 4294901760, %v1315_v43  ;;  %v84_v50 = vand.u32 4294901760, %v1320_v44  ;;  %v121_v51 = vand.u32 4294901760, %v1301_v40  ;;  %v146_v52 = vand.u32 4294901760, %v1295_v37 }
   0xb   :  { %1018 = vmatprep.subr.bf16.mxu1 %v1173_v0  ;;  %1090 = vmatprep.subr.bf16.mxu0 %v1173_v0  ;;  %v1340_v53 = vpack.c.bf16 %v78_v42, %v75_v39  ;;  %v133_v54 = vsub.f32 %v1271_v29, %v132_v45  ;;  %v140_v55 = vsub.f32 %v1275_v31, %v139_v46  ;;  %v153_v56 = vand.u32 4294901760, %v1297_v38 }
   0xc   :  { %v1347_v57 = vsub.f32 %v21_v16, %v57_v19  ;;  %v1349_v58 = vsub.f32 %v22_v17, %v60_v20  ;;  %v122_v59 = vsub.f32 %v1301_v40, %v121_v51  ;;  %v147_v60 = vsub.f32 %v1295_v37, %v146_v52 }
   0xd   :  { %v160_v61 = vand.u32 4294901760, %v1326_v47  ;;  %v167_v62 = vand.u32 4294901760, %v1328_v48  ;;  %v1361_v63 = vpack.c.bf16 %v84_v50, %v81_v49  ;;  %v134_v1 = vand.u32 4294901760, %v133_v54 }
   0xe   :  { %1020 = vmatpush3.bf16.msra.mxu1 %v1236_v18  ;;  %1092 = vmatpush3.bf16.msra.mxu0 %v1236_v18  ;;  %v141_v2 = vand.u32 4294901760, %v140_v55  ;;  %v154_v3 = vsub.f32 %v1297_v38, %v153_v56  ;;  %v1367_v4 = vsub.f32 %v1243_v21, %v63_v24  ;;  %v1370_v5 = vsub.f32 %v1248_v22, %v66_v25 }
   0xf   :  { %1021 = vmatprep.subr.bf16.mxu1 %v1173_v0  ;;  %1093 = vmatprep.subr.bf16.mxu0 %v1173_v0  ;;  %v1109_v6 = vpack.c.bf16 %v139_v46, %v132_v45  ;;  %v123_v7 = vand.u32 4294901760, %v122_v59  ;;  %v148_v9 = vand.u32 4294901760, %v147_v60  ;;  %v161_v10 = vsub.f32 %v1326_v47, %v160_v61 }
  0x10   :  { %v168_v11 = vsub.f32 %v1328_v48, %v167_v62  ;;  %v1037_v14 = vpack.c.bf16 %v141_v2, %v134_v1  ;;  %v155_v15 = vand.u32 4294901760, %v154_v3  ;;  %v174_v16 = vand.u32 4294901760, %v1347_v57 }
  0x11   :  { %v181_v17 = vand.u32 4294901760, %v1349_v58  ;;  %v1383_v19 = vsub.f32 %v1264_v27, %v69_v33  ;;  %v1388_v20 = vsub.f32 %v1269_v28, %v72_v34  ;;  %v1112_v21 = vpack.c.bf16 %v153_v56, %v146_v52 }
  0x12   :  { %1023 = vmatpush3.bf16.msra.mxu1 %v1252_v23  ;;  %1095 = vmatpush3.bf16.msra.mxu0 %v1252_v23  ;;  %v162_v22 = vand.u32 4294901760, %v161_v10  ;;  %v169_v24 = vand.u32 4294901760, %v168_v11  ;;  %v188_v25 = vand.u32 4294901760, %v1367_v4  ;;  %v1040_v26 = vpack.c.bf16 %v155_v15, %v148_v9 }
  0x13   :  { %1024 = vmatprep.subr.bf16.mxu1 %v1173_v0  ;;  %1096 = vmatprep.subr.bf16.mxu0 %v1173_v0  ;;  %v175_v45 = vsub.f32 %v1347_v57, %v174_v16  ;;  %v182_v27 = vsub.f32 %v1349_v58, %v181_v17  ;;  %v195_v33 = vand.u32 4294901760, %v1370_v5  ;;  %v1399_v28 = vsub.f32 %v1286_v35, %v75_v39 }
  0x14   :  { %v1404_v34 = vsub.f32 %v1293_v36, %v78_v42  ;;  %v1043_v46 = vpack.c.bf16 %v169_v24, %v162_v22  ;;  %v189_v52 = vsub.f32 %v1367_v4, %v188_v25  ;;  %v202_v54 = vand.u32 4294901760, %v1383_v19 }
  0x15   :  { %v176_v35 = vand.u32 4294901760, %v175_v45  ;;  %v183_v39 = vand.u32 4294901760, %v182_v27  ;;  %v196_v55 = vsub.f32 %v1370_v5, %v195_v33  ;;  %v209_v36 = vand.u32 4294901760, %v1388_v20 }
  0x16   :  { %1026 = vmatpush3.bf16.msra.mxu1 %v1279_v32  ;;  %1098 = vmatpush3.bf16.msra.mxu0 %v1279_v32  ;;  %v1419_v42 = vsub.f32 %v1315_v43, %v81_v49  ;;  %v1424_v56 = vsub.f32 %v1320_v44, %v84_v50  ;;  %v1118_v59 = vpack.c.bf16 %v181_v17, %v174_v16  ;;  %v190_v60 = vand.u32 4294901760, %v189_v52 }
  0x17   :  { %1027 = vmatprep.subr.bf16.mxu1 %v1173_v0  ;;  %1099 = vmatprep.subr.bf16.mxu0 %v1173_v0  ;;  %v1046_v1 = vpack.c.bf16 %v183_v39, %v176_v35  ;;  %v197_v2 = vand.u32 4294901760, %v196_v55  ;;  %v210_v3 = vsub.f32 %v1388_v20, %v209_v36  ;;  %v223_v43 = vand.u32 4294901760, %v1404_v34 }
  0x18   :  { %v1121_v44 = vpack.c.bf16 %v195_v33, %v188_v25  ;;  %v237_v11 = vand.u32 4294901760, %v1424_v56 }
  0x19   :  { %v211_v9 = vand.u32 4294901760, %v210_v3  ;;  %v224_v10 = vsub.f32 %v1404_v34, %v223_v43 }
  0x1a   :  { %1029 = vmatpush3.bf16.msra.mxu1 %v1309_v41  ;;  %1101 = vmatpush3.bf16.msra.mxu0 %v1309_v41  ;;  %v238_v22 = vsub.f32 %v1424_v56, %v237_v11 }
  0x1b   :  { %1030 = vmatprep.subr.bf16.mxu1 %v1173_v0  ;;  %1102 = vmatprep.subr.bf16.mxu0 %v1173_v0  ;;  %v225_v17 = vand.u32 4294901760, %v224_v10 }
  0x1c   :  { %v239_v45 = vand.u32 4294901760, %v238_v22 }
  0x1e   :  { %1032 = vmatpush3.bf16.msra.mxu1 %v1340_v53  ;;  %1104 = vmatpush3.bf16.msra.mxu0 %v1340_v53 }
  0x1f   :  { %1033 = vmatprep.subr.bf16.mxu1 %v1173_v0  ;;  %1105 = vmatprep.subr.bf16.mxu0 %v1173_v0 }
  0x22   :  { %1035 = vmatpush3.bf16.msra.mxu1 %v1361_v63  ;;  %1107 = vmatpush3.bf16.msra.mxu0 %v1361_v63 }
  0x23   :  { %1036 = vmatprep.subr.bf16.mxu1 %v1173_v0  ;;  %1108 = vmatprep.subr.bf16.mxu0 %v1173_v0 }
  0x25   :  { %835 = vmatmul.mubr.f32.vlgmr.msra.gmra.mrb[0].mxu1 %v123_v7  ;;  %940 = vmatmul.mubr.f32.vlgmr.msra.gmra.mrb[0].mxu0 %v121_v51  ;;  %v1115_v51 = vpack.c.bf16 %v167_v62, %v160_v61  ;;  %v203_v61 = vsub.f32 %v1383_v19, %v202_v54  ;;  %v216_v62 = vand.u32 4294901760, %v1399_v28  ;;  %v1049_v7 = vpack.c.bf16 %v197_v2, %v190_v60 }
  0x26   :  { %1038 = vmatpush3.bf16.msra.mxu1 %v1037_v14  ;;  %1110 = vmatpush3.bf16.msra.mxu0 %v1109_v6  ;;  %v230_v6 = vand.u32 4294901760, %v1419_v42  ;;  %v1124_v14 = vpack.c.bf16 %v209_v36, %v202_v54 }
  0x27   :  { %1039 = vmatprep.subr.bf16.mxu1 %v1173_v0  ;;  %1111 = vmatprep.subr.bf16.mxu0 %v1173_v0  ;;  %v204_v49 = vand.u32 4294901760, %v203_v61  ;;  %v217_v50 = vsub.f32 %v1399_v28, %v216_v62  ;;  %v1127_v25 = vpack.c.bf16 %v223_v43, %v216_v62 }
  0x28   :  { %869 = vmatprep.mubr.msk.f32.mxu1 %vm1174_vm0, %v1175_v8  ;;  %974 = vmatprep.mubr.msk.f32.mxu0 %vm1174_vm0, %v1175_v8  ;;  %v1130_v33 = vpack.c.bf16 %v237_v11, %v230_v6 }
  0x29   :  { %v218_v15 = vand.u32 4294901760, %v217_v50  ;;  %v1052_v16 = vpack.c.bf16 %v211_v9, %v204_v49 }
  0x2a   :  { %1041 = vmatpush3.bf16.msra.mxu1 %v1040_v26  ;;  %1113 = vmatpush3.bf16.msra.mxu0 %v1112_v21  ;;  %v231_v21 = vsub.f32 %v1419_v42, %v230_v6 }
  0x2b   :  { %1042 = vmatprep.subr.bf16.mxu1 %v1173_v0  ;;  %1114 = vmatprep.subr.bf16.mxu0 %v1173_v0  ;;  %v1055_v24 = vpack.c.bf16 %v225_v17, %v218_v15 }
  0x2c   :  { %v232_v26 = vand.u32 4294901760, %v231_v21 }
  0x2e   :  { %1044 = vmatpush3.bf16.msra.mxu1 %v1043_v46  ;;  %1116 = vmatpush3.bf16.msra.mxu0 %v1115_v51  ;;  %v1058_v27 = vpack.c.bf16 %v239_v45, %v232_v26  ;;  %v1061_v46 = vpack.c.bf16 %v1275_v31, %v1271_v29  ;;  %v1064_v51 = vpack.c.bf16 %v1297_v38, %v1295_v37  ;;  %v699_v31 = vld [vmem:[%s1502_s2] ss:$0 sm:$0xff] }
  0x2f   :  { %1045 = vmatprep.subr.bf16.mxu1 %v1173_v0  ;;  %1117 = vmatprep.subr.bf16.mxu0 %v1173_v0  ;;  %v1067_v29 = vpack.c.bf16 %v1328_v48, %v1326_v47 }
  0x32   :  { %1047 = vmatpush3.bf16.msra.mxu1 %v1046_v1  ;;  %1119 = vmatpush3.bf16.msra.mxu0 %v1118_v59 }
  0x33   :  { %1048 = vmatprep.subr.bf16.mxu1 %v1173_v0  ;;  %1120 = vmatprep.subr.bf16.mxu0 %v1173_v0 }
  0x36   :  { %1050 = vmatpush3.bf16.msra.mxu1 %v1049_v7  ;;  %1122 = vmatpush3.bf16.msra.mxu0 %v1121_v44 }
  0x37   :  { %1051 = vmatprep.subr.bf16.mxu1 %v1173_v0  ;;  %1123 = vmatprep.subr.bf16.mxu0 %v1173_v0 }
  0x3a   :  { %1053 = vmatpush3.bf16.msra.mxu1 %v1052_v16  ;;  %1125 = vmatpush3.bf16.msra.mxu0 %v1124_v14 }
  0x3b   :  { %1054 = vmatprep.subr.bf16.mxu1 %v1173_v0  ;;  %1126 = vmatprep.subr.bf16.mxu0 %v1173_v0 }
  0x3e   :  { %1056 = vmatpush3.bf16.msra.mxu1 %v1055_v24  ;;  %1128 = vmatpush3.bf16.msra.mxu0 %v1127_v25 }
  0x3f   :  { %1057 = vmatprep.subr.bf16.mxu1 %v1173_v0  ;;  %1129 = vmatprep.subr.bf16.mxu0 %v1173_v0 }
  0x42   :  { %1059 = vmatpush3.bf16.msra.mxu1 %v1058_v27  ;;  %1131 = vmatpush3.bf16.msra.mxu0 %v1130_v33 }
  0x43   :  { %1060 = vmatprep.subr.bf16.mxu1 %v1173_v0  ;;  %1132 = vmatprep.subr.bf16.mxu0 %v1173_v0 }
  0x45   :  { %870 = vmatmul.mubr.f32.vlgmr.msra.gmra.mrb[0].mxu1 %v1273_v30  ;;  %975 = vmatmul.mubr.f32.vlgmr.msra.gmra.mrb[0].mxu0 %v1273_v30 }
  0x46   :  { %1062 = vmatpush3.bf16.msra.mxu1 %v1061_v46  ;;  %1134 = vmatpush3.bf16.msra.mxu0 %v1220_v12  ;;  %v1070_v12 = vpack.c.bf16 %v1349_v58, %v1347_v57 }
  0x47   :  { %1063 = vmatprep.subr.bf16.mxu1 %v1173_v0  ;;  %1135 = vmatprep.subr.bf16.mxu0 %v1173_v0 }
  0x48   :  { %904 = vmatprep.mubr.msk.f32.mxu1 %vm1174_vm0, %v1175_v8  ;;  %1009 = vmatprep.mubr.msk.f32.mxu0 %vm1174_vm0, %v1175_v8  ;;  %v1073_v8 = vpack.c.bf16 %v1370_v5, %v1367_v4 }
  0x4a   :  { %1065 = vmatpush3.bf16.msra.mxu1 %v1064_v51  ;;  %1137 = vmatpush3.bf16.msra.mxu0 %v1224_v13  ;;  %v1076_v13 = vpack.c.bf16 %v1388_v20, %v1383_v19 }
  0x4b   :  { %1066 = vmatprep.subr.bf16.mxu1 %v1173_v0  ;;  %1138 = vmatprep.subr.bf16.mxu0 %v1173_v0 }
  0x4e   :  { %1068 = vmatpush3.bf16.msra.mxu1 %v1067_v29  ;;  %1140 = vmatpush3.bf16.msra.mxu0 %v1236_v18  ;;  %v1079_v18 = vpack.c.bf16 %v1404_v34, %v1399_v28 }
  0x4f   :  { %1069 = vmatprep.subr.bf16.mxu1 %v1173_v0  ;;  %1141 = vmatprep.subr.bf16.mxu0 %v1173_v0 }
  0x52   :  { %1071 = vmatpush3.bf16.msra.mxu1 %v1070_v12  ;;  %1143 = vmatpush3.bf16.msra.mxu0 %v1252_v23  ;;  %v1082_v23 = vpack.c.bf16 %v1424_v56, %v1419_v42 }
  0x53   :  { %1072 = vmatprep.subr.bf16.mxu1 %v1173_v0  ;;  %1144 = vmatprep.subr.bf16.mxu0 %v1173_v0 }
  0x56   :  { %1074 = vmatpush3.bf16.msra.mxu1 %v1073_v8  ;;  %1146 = vmatpush3.bf16.msra.mxu0 %v1279_v32 }
  0x57   :  { %1075 = vmatprep.subr.bf16.mxu1 %v1173_v0  ;;  %1147 = vmatprep.subr.bf16.mxu0 %v1173_v0 }
  0x5a   :  { %1077 = vmatpush3.bf16.msra.mxu1 %v1076_v13  ;;  %1149 = vmatpush3.bf16.msra.mxu0 %v1309_v41 }
  0x5b   :  { %1078 = vmatprep.subr.bf16.mxu1 %v1173_v0  ;;  %1150 = vmatprep.subr.bf16.mxu0 %v1173_v0 }
  0x5e   :  { %1080 = vmatpush3.bf16.msra.mxu1 %v1079_v18  ;;  %1152 = vmatpush3.bf16.msra.mxu0 %v1340_v53 }
  0x5f   :  { %1081 = vmatprep.subr.bf16.mxu1 %v1173_v0  ;;  %1153 = vmatprep.subr.bf16.mxu0 %v1173_v0 }
  0x62   :  { %1083 = vmatpush3.bf16.msra.mxu1 %v1082_v23  ;;  %1155 = vmatpush3.bf16.msra.mxu0 %v1361_v63 }
  0x65   :  { %905 = vmatmul.mubr.f32.vlgmr.msra.gmra.mrb[0].mxu1 %v1301_v40  ;;  %1010 = vmatmul.mubr.f32.vlgmr.msra.gmra.mrb[0].mxu0 %v1273_v30 }
 0x138   :  { %v380_v32 = vpop.f32.mrb[0].mxu1  ;;  %v675_v37 = vpop.f32.mrb[0].mxu0 }
 0x139   :  { %v1156_v38 = vadd.f32 %v699_v31, %v380_v32  ;;  %v906_v41 = vpop.f32.mrb[1].mxu1  ;;  %v1011_v47 = vpop.f32.mrb[1].mxu0 }
 0x13b   :  { %v1157_v48 = vadd.f32 %v1156_v38, %v675_v37 }
 0x13d   :  { %679 = vmax.xlane.f32.xlu0 %v1157_v48 }
 0x1ca   :  { %v680_v53 = vpop.xlane.xlu0 %679 }
 0x1cb   :  { %v681_v0 = vsub.f32 %v1157_v48, %v680_v53 }
 0x1cd   :  { %v682_v57 = vmul.f32 1.442695, %v681_v0 }
 0x1cf   :  { %1169 = vpow2.f32 %v682_v57 }
 0x1d9   :  { %v1170_v58 = vpop.eup %1169 }
 0x1da   :  { %684 = vadd.xlane.f32.xlu0 %v1170_v58 }
 0x267   :  { %v685_v40 = vpop.xlane.xlu0 %684 }
 0x268   :  { %1171 = vrcp.f32 %v685_v40 }
 0x272   :  { %v1172_v30 = vpop.eup %1171 }
 0x273   :  { %v687_v63 = vmul.f32 %v1172_v30, %v1170_v58 }
 0x275   :  { %v688_v4 = vrot.slane %v687_v63, 4 }
 0x277   :  { %v689_v5 = vmax.f32 %v687_v63, %v688_v4 }
 0x279   :  { %v690_v19 = vrot.slane %v689_v5, 2 }
 0x27b   :  { %v691_v20 = vmax.f32 %v689_v5, %v690_v19 }
 0x27d   :  { %v692_v28 = vrot.slane %v691_v20, 1 }
 0x27f   :  { %v693_v34 = vmax.f32 %v691_v20, %v692_v28 }
 0x281   :  { %694 = vst [vmem:[%s1503_s3] sm:$0x1] %v693_v34 }

</bundles_post_ra>
